<compile_context>
chip_gen: v6e
topology: v6e:2x2x1
jax: 0.10.0
libtpu: 0.0.40
codegen_flags: <defaults>
</compile_context>

<pallas_src>
import numpy as np
import jax
import jax.numpy as jnp
from jax.experimental import pallas as pl
from jax.experimental.pallas import tpu as pltpu


def _round_up(x, m):
    return (x + m - 1) // m * m


# ----------------------------------------------------------------------------
# Host-side log-uniform candidate sampler (same math as the PyTorch
# LogUniformSampler helper used by the module).
# TODO(synk): candidate sampling / accidental-match detection is inherently
# host-side & data-dependent (numpy), mirroring the PyTorch module which also
# samples on CPU.
# ----------------------------------------------------------------------------
class LogUniformSampler:
    def __init__(self, ntokens):
        self.N = ntokens
        ids = np.arange(self.N, dtype=np.float64)
        # P(k) = (log(k+2) - log(k+1)) / log(N+1)
        self.prob = (np.log(ids + 2.0) - np.log(ids + 1.0)) / np.log(self.N + 1.0)

    def expected_count(self, num_tries, ids):
        ids = np.asarray(ids, dtype=np.int64)
        return -np.expm1(num_tries * np.log1p(-self.prob[ids]))

    def sample(self, size, labels, uniforms):
        # uniforms: pre-drawn U(0,1) of shape (size,) for determinism
        log_n = np.log(self.N)
        value = np.floor(np.exp(np.asarray(uniforms, np.float64) * log_n)).astype(np.int64) - 1
        sample_ids = np.clip(value, 0, self.N - 1)
        true_freq = self.expected_count(size, labels)
        sample_freq = self.expected_count(size, sample_ids)
        return sample_ids, true_freq, sample_freq


# ----------------------------------------------------------------------------
# Kernel.  Grid = (batch tiles, S tiles).  For each batch tile:
#   j==0 :  h = x @ Wp + bp            (bf16 MXU, f32 acc)  -> VMEM scratch
#           true_logit = sum(h*true_w) + (tb - log(tf))     -> VMEM scratch
#   all j:  sl = h @ sw_tile + (sb - log(sf)); accidental hits & pad -> -1e37
#           combined slab: lane 0 = true logit, lanes 1..S = sampled logits
# ----------------------------------------------------------------------------
def _make_kernel(has_proj, n_valid):
    """n_valid = 1 + nsampled (true logit in global lane 0, samples in 1..S)."""

    def kernel(*refs):
        if has_proj:
            (x_ref, wp_ref, bp_ref, tw_ref, tbc_ref,
             sw_ref, sbc_ref, lab_ref, sid_ref,
             out_ref, h_ref, t_ref) = refs
        else:
            (x_ref, tw_ref, tbc_ref,
             sw_ref, sbc_ref, lab_ref, sid_ref,
             out_ref, h_ref, t_ref) = refs

        j = pl.program_id(1)

        # h and the true logit depend only on the batch tile: compute once per
        # batch tile (first S tile) and keep in VMEM scratch across S tiles.
        @pl.when(j == 0)
        def _():
            if has_proj:
                h = jnp.dot(x_ref[...], wp_ref[...],
                            preferred_element_type=jnp.float32) + bp_ref[...]
            else:
                h = x_ref[...].astype(jnp.float32)
            t_ref[...] = (jnp.sum(h * tw_ref[...].astype(jnp.float32),
                                  axis=1, keepdims=True) + tbc_ref[...])
            h_ref[...] = h.astype(jnp.bfloat16)

        tb, ts = out_ref.shape
        # sampled logits for this S tile (bf16 MXU operands, f32 accumulation)
        sl = jnp.dot(h_ref[...], sw_ref[...],
                     preferred_element_type=jnp.float32) + sbc_ref[...]

        glane = j * ts + jax.lax.broadcasted_iota(jnp.int32, (tb, ts), 1)
        # Accidental hits and padded lanes -> -1e37.  (Representable in bf16
        # too: bf16 shares f32's 8-bit exponent range.)
        mask = (lab_ref[...] == sid_ref[...]) | (glane >= n_valid)
        sl = jnp.where(mask, jnp.float32(-1e37), sl)
        # Lane 0 of the combined slab carries the true logit.
        out_ref[...] = jnp.where(glane == 0, t_ref[...], sl).astype(out_ref.dtype)

    return kernel


def sampled_softmax_forward(inputs, labels, sample_ids, true_freq, sample_freq,
                            softmax_w, softmax_b, proj_w=None, proj_b=None, *,
                            block_b=None, block_s=None, out_dtype=jnp.float32):
    """Pallas-backed equivalent of SampledSoftmax.forward (training path)."""
    f32, bf16 = jnp.float32, jnp.bfloat16
    has_proj = proj_w is not None

    B = int(inputs.shape[0])
    S = int(sample_ids.shape[0])
    nhid = int(softmax_w.shape[1])
    in_feat = int(inputs.shape[1])            # n_proj if has_proj else nhid

    # ---- generation-aware sizing -------------------------------------------
    try:
        vmem_cap = int(pltpu.get_tpu_info().vmem_capacity_bytes)
    except Exception:
        vmem_cap = 64 * 1024 * 1024           # conservative (v7x per-core)

    out_bytes = jnp.dtype(out_dtype).itemsize
    if block_b is None:
        block_b = 128 if vmem_cap <= 64 * 1024 * 1024 else 256
    TB = _round_up(min(block_b, _round_up(B, 16)), 8)
    Bp = _round_up(B, TB)

    L0 = _round_up(1 + S, 128)                # true logit in lane 0, samples in 1..S
    if block_s is None:
        # Budget the (double-buffered) sample-side streams (weights tile +
        # output tile + bias/id rows) to ~1/3 of usable VMEM.
        per_lane = 2 * (nhid * 2 + TB * out_bytes + 8)
        block_s = max(128, int(0.85 * vmem_cap / 3.0) // per_lane // 128 * 128)
    n_s = -(-L0 // block_s)                   # number of S tiles
    TS = _round_up(-(-L0 // n_s), 128)        # lane-dense tile, padding spread evenly
    L_pad = TS * n_s

    # ---- host-side gathers, folded corrections, transposes, padding --------
    true_w = jnp.pad(jnp.take(softmax_w, labels, axis=0).astype(bf16),
                     ((0, Bp - B), (0, 0)))                               # (Bp, nhid)
    true_b = jnp.take(softmax_b, labels, axis=0).reshape(B)
    tbc = jnp.pad((true_b - jnp.log(true_freq.astype(f32))).reshape(B, 1),
                  ((0, Bp - B), (0, 0))).astype(f32)                      # (Bp, 1)
    lab = jnp.pad(labels.astype(jnp.int32).reshape(B, 1),
                  ((0, Bp - B), (0, 0)), constant_values=-2)              # (Bp, 1)

    # sample-side operands shifted by one lane (lane 0 reserved for true logit)
    samp_w_t = jnp.pad(jnp.take(softmax_w, sample_ids, axis=0).astype(bf16).T,
                       ((0, 0), (1, L_pad - 1 - S)))                      # (nhid, L_pad)
    samp_b = jnp.take(softmax_b, sample_ids, axis=0).reshape(S)
    sbc = jnp.pad((samp_b - jnp.log(sample_freq.astype(f32))).reshape(1, S),
                  ((0, 0), (1, L_pad - 1 - S))).astype(f32)               # (1, L_pad)
    sid = jnp.pad(sample_ids.astype(jnp.int32).reshape(1, S),
                  ((0, 0), (1, L_pad - 1 - S)), constant_values=-1)       # (1, L_pad)

    x = jnp.pad(inputs.astype(bf16), ((0, Bp - B), (0, 0)))               # (Bp, in_feat)
    if has_proj:
        wp_t = proj_w.astype(bf16).T                                      # (n_proj, nhid)
        bp = proj_b.reshape(1, nhid).astype(f32)

    grid = (Bp // TB, n_s)
    btile = lambda i, j: (i, 0)      # per-batch operands (constant across S tiles)
    stile = lambda i, j: (0, j)      # per-S-tile operands
    resident = lambda i, j: (0, 0)   # resident across the whole grid

    # ---- advisory cost + VMEM budget (counting 2x buffering as upper bound) --
    flops = (2 * Bp * nhid * in_feat * int(has_proj)
             + 2 * Bp * nhid * L_pad + 4 * Bp * nhid)
    bytes_accessed = int(
        x.size * 2 + true_w.size * 2 + tbc.size * 4 + lab.size * 4
        + (Bp // TB if n_s > 1 else 1) * (samp_w_t.size * 2 + sbc.size * 4 + sid.size * 4)
        + ((wp_t.size * 2 + bp.size * 4) if has_proj else 0)
        + Bp * L_pad * out_bytes)
    cost = pl.CostEstimate(flops=int(flops), transcendentals=0,
                           bytes_accessed=bytes_accessed)

    need = (2 * ((wp_t.size * 2 + bp.size * 4) if has_proj else 0)
            + 2 * TB * (in_feat * 2 + nhid * 2 + 4 + 4)
            + 2 * (nhid * TS * 2 + TS * 8 + TB * TS * out_bytes)
            + TB * nhid * 2 + TB * 128 * 4
            + (4 << 20))
    vmem_limit = int(min(0.85 * vmem_cap, max(need, 32 << 20)))

    kernel = _make_kernel(has_proj, 1 + S)
    out_shape = jax.ShapeDtypeStruct((Bp, L_pad), out_dtype)
    scratch = [pltpu.VMEM((TB, nhid), bf16),   # h (bf16, reused across S tiles)
               pltpu.VMEM((TB, 1), f32)]       # true logit

    def build(single_buffer_constant_blocks):
        def const_spec(shape, index_map):
            if single_buffer_constant_blocks:
                return pl.BlockSpec(shape, index_map, pipeline_mode=pl.Buffered(1))
            return pl.BlockSpec(shape, index_map)

        in_specs, args = [], []
        in_specs.append(pl.BlockSpec((TB, in_feat), btile)); args.append(x)
        if has_proj:
            in_specs += [const_spec((in_feat, nhid), resident),
                         const_spec((1, nhid), resident)]
            args += [wp_t, bp]
        # sample-side streams are effectively resident when n_s == 1
        sspec = const_spec if n_s == 1 else (lambda shp, imap: pl.BlockSpec(shp, imap))
        in_specs += [pl.BlockSpec((TB, nhid), btile),   # gathered true weights
                     pl.BlockSpec((TB, 1), btile),      # true_bias - log(true_freq)
                     sspec((nhid, TS), stile),          # gathered sample weights (T)
                     sspec((1, TS), stile),             # sample_bias - log(sample_freq)
                     pl.BlockSpec((TB, 1), btile),      # labels
                     sspec((1, TS), stile)]             # sample ids
        args += [true_w, tbc, samp_w_t, sbc, lab, sid]

        call = pl.pallas_call(
            kernel,
            out_shape=out_shape,
            grid=grid,
            in_specs=in_specs,
            out_specs=pl.BlockSpec((TB, TS), lambda i, j: (i, j)),
            scratch_shapes=scratch,
            compiler_params=pltpu.CompilerParams(
                dimension_semantics=("parallel", "arbitrary"),
                vmem_limit_bytes=vmem_limit),
            cost_estimate=cost)
        return call, args

    try:
        call, args = build(True)
        out = call(*args)
    except Exception:
        # TODO(synk): pl.Buffered(1) single-buffering of constant-index blocks
        # is not supported by this JAX version; fall back to default buffering.
        call, args = build(False)
        out = call(*args)

    # strip batch/lane padding: lane 0 = true logit, lanes 1..S = sampled logits
    logits = out[:B, :1 + S].astype(f32)
    new_targets = jnp.zeros((B,), dtype=jnp.int32)   # PyTorch returns LongTensor zeros
    return logits, new_targets


# ----------------------------------------------------------------------------
# Reference mirroring the PyTorch math and the kernel's bf16 dtype flow.
# (The kernel folds -log(sample_freq) before -1e37 masking; the reference masks
#  first — numerically identical in f32 since -1e37 absorbs the correction.)
# ----------------------------------------------------------------------------
def reference_forward(inputs, labels, sample_ids, true_freq, sample_freq,
                      softmax_w, softmax_b, proj_w=None, proj_b=None):
    def bf(a):
        return np.asarray(jnp.asarray(a, jnp.float32).astype(jnp.bfloat16)
                          .astype(jnp.float32))
    x = bf(inputs)
    if proj_w is not None:
        h = (x @ bf(proj_w).T + np.asarray(proj_b, np.float32)).astype(np.float32)
    else:
        h = x.astype(np.float32)
    labels = np.asarray(labels)
    sample_ids = np.asarray(sample_ids)
    tw = bf(np.asarray(softmax_w)[labels])
    tb = np.asarray(softmax_b, np.float32)[labels, 0]
    sw = bf(np.asarray(softmax_w)[sample_ids])
    sb = np.asarray(softmax_b, np.float32)[sample_ids, 0]
    true_logits = np.sum(h * tw, axis=1) + tb
    hb = bf(h)
    sample_logits = hb @ sw.T + sb
    hit = labels[:, None] == sample_ids[None, :]
    sample_logits = np.where(hit, np.float32(-1e37), sample_logits)
    true_logits = true_logits - np.log(np.asarray(true_freq, np.float32))
    sample_logits = sample_logits - np.log(np.asarray(sample_freq, np.float32))[None, :]
    return np.concatenate([true_logits[:, None], sample_logits], axis=1).astype(np.float32)


if __name__ == "__main__":
    def run_case(case_id, ntokens, nsampled, nhid, n_proj, batch, use_proj):
        key = jax.random.fold_in(jax.random.PRNGKey(0), case_id)
        k_x, k_lab, k_w, k_b, k_pw, k_pb, k_samp = jax.random.split(key, 7)

        # Deterministic "parameters" (stand-ins for nn.Embedding / nn.Linear).
        softmax_w = jax.random.normal(k_w, (ntokens, nhid), jnp.float32) * 0.1
        softmax_b = jax.random.normal(k_b, (ntokens, 1), jnp.float32) * 0.1
        if use_proj:
            proj_w = jax.random.normal(k_pw, (nhid, n_proj), jnp.float32) * 0.1
            proj_b = jax.random.normal(k_pb, (nhid,), jnp.float32) * 0.1
            in_feat = n_proj
        else:  # n_proj == nhid -> module has no projection layer
            proj_w, proj_b = None, None
            in_feat = nhid

        inputs = jax.random.normal(k_x, (batch, in_feat), jnp.float32)
        labels = jax.random.randint(k_lab, (batch,), 0, ntokens, jnp.int32)

        # Host-side candidate sampling (deterministic via PRNGKey-derived uniforms).
        sampler = LogUniformSampler(ntokens)
        uniforms = np.asarray(jax.random.uniform(k_samp, (nsampled,), jnp.float32),
                              dtype=np.float64)
        sample_ids_np, true_freq_np, sample_freq_np = sampler.sample(
            nsampled, np.asarray(labels), uniforms)

        sample_ids = jnp.asarray(sample_ids_np, dtype=jnp.int32)
        true_freq = jnp.asarray(true_freq_np, dtype=jnp.float32)
        sample_freq = jnp.asarray(sample_freq_np, dtype=jnp.float32)

        logits, new_targets = sampled_softmax_forward(
            inputs, labels, sample_ids, true_freq, sample_freq,
            softmax_w, softmax_b, proj_w, proj_b)
        logits = jax.block_until_ready(logits)
        new_targets = jax.block_until_ready(new_targets)

        ref = reference_forward(
            np.asarray(inputs), np.asarray(labels), np.asarray(sample_ids),
            np.asarray(true_freq), np.asarray(sample_freq),
            np.asarray(softmax_w), np.asarray(softmax_b),
            None if proj_w is None else np.asarray(proj_w),
            None if proj_b is None else np.asarray(proj_b))

        assert logits.shape == (batch, 1 + nsampled)
        assert new_targets.shape == (batch,)
        np.testing.assert_allclose(np.asarray(logits), ref, rtol=1e-2, atol=1e-2)

    # with projection (n_proj != nhid) ...
    run_case(0, ntokens=1000, nsampled=64, nhid=32, n_proj=24, batch=8, use_proj=True)
    # ... and without projection (n_proj == nhid), as in the PyTorch module
    run_case(1, ntokens=1000, nsampled=48, nhid=32, n_proj=32, batch=8, use_proj=False)
    print("KERNEL_OK")
</pallas_src>

<mosaic_0001>
module attributes {stable_mosaic.version = 11 : i64} {
  func.func @kernel(%arg0: i32, %arg1: i32, %arg2: memref<16x24xbf16, #tpu.memory_space<vmem>>, %arg3: memref<24x32xbf16, #tpu.memory_space<vmem>>, %arg4: memref<1x32xf32, #tpu.memory_space<vmem>>, %arg5: memref<16x32xbf16, #tpu.memory_space<vmem>>, %arg6: memref<16x1xf32, #tpu.memory_space<vmem>>, %arg7: memref<32x128xbf16, #tpu.memory_space<vmem>>, %arg8: memref<1x128xf32, #tpu.memory_space<vmem>>, %arg9: memref<16x1xi32, #tpu.memory_space<vmem>>, %arg10: memref<1x128xi32, #tpu.memory_space<vmem>>, %arg11: memref<16x128xf32, #tpu.memory_space<vmem>>, %arg12: memref<16x32xbf16, #tpu.memory_space<vmem>>, %arg13: memref<16x1xf32, #tpu.memory_space<vmem>>) attributes {dimension_semantics = [#tpu.dimension_semantics<parallel>, #tpu.dimension_semantics<arbitrary>], iteration_bounds = array<i64: 1, 1>, scalar_prefetch = 0 : i64, scratch_operands = 2 : i64, tpu.core_type = #tpu.core_type<tc>, window_params = [{transform_indices = @transform_0, window_bounds = array<i64: 16, 24>}, {pipeline_mode = #tpu.pipeline_mode<synchronous>, transform_indices = @transform_1, window_bounds = array<i64: 24, 32>}, {pipeline_mode = #tpu.pipeline_mode<synchronous>, transform_indices = @transform_2, window_bounds = array<i64: 1, 32>}, {transform_indices = @transform_3, window_bounds = array<i64: 16, 32>}, {transform_indices = @transform_4, window_bounds = array<i64: 16, 1>}, {pipeline_mode = #tpu.pipeline_mode<synchronous>, transform_indices = @transform_5, window_bounds = array<i64: 32, 128>}, {pipeline_mode = #tpu.pipeline_mode<synchronous>, transform_indices = @transform_6, window_bounds = array<i64: 1, 128>}, {transform_indices = @transform_7, window_bounds = array<i64: 16, 1>}, {pipeline_mode = #tpu.pipeline_mode<synchronous>, transform_indices = @transform_8, window_bounds = array<i64: 1, 128>}, {transform_indices = @transform_9, window_bounds = array<i64: 16, 128>}]} {
    %c0_i32 = arith.constant 0 : i32
    %0 = arith.cmpi eq, %arg1, %c0_i32 : i32
    %1 = arith.extui %0 : i1 to i32
    %c0_i32_0 = arith.constant 0 : i32
    %2 = arith.cmpi ne, %1, %c0_i32_0 : i32
    scf.if %2 {
      %c0_16 = arith.constant 0 : index
      %c0_17 = arith.constant 0 : index
      %30 = vector.load %arg2[%c0_16, %c0_17] : memref<16x24xbf16, #tpu.memory_space<vmem>>, vector<16x24xbf16>
      %c0_18 = arith.constant 0 : index
      %c0_19 = arith.constant 0 : index
      %31 = vector.load %arg3[%c0_18, %c0_19] : memref<24x32xbf16, #tpu.memory_space<vmem>>, vector<24x32xbf16>
      %cst_20 = arith.constant dense<0.000000e+00> : vector<16x32xf32>
      %32 = tpu.matmul %30, %31, %cst_20 {dimension_numbers = #tpu.dot_dimension_numbers<[1], [0], [0], [1], [0, 0, 1, 1], [], []>} : vector<16x24xbf16>, vector<24x32xbf16>, vector<16x32xf32> -> vector<16x32xf32>
      %c0_21 = arith.constant 0 : index
      %c0_22 = arith.constant 0 : index
      %33 = vector.load %arg4[%c0_21, %c0_22] : memref<1x32xf32, #tpu.memory_space<vmem>>, vector<1x32xf32>
      %34 = vector.broadcast %33 : vector<1x32xf32> to vector<16x32xf32>
      %35 = arith.addf %32, %34 : vector<16x32xf32>
      %c0_23 = arith.constant 0 : index
      %c0_24 = arith.constant 0 : index
      %36 = vector.load %arg5[%c0_23, %c0_24] : memref<16x32xbf16, #tpu.memory_space<vmem>>, vector<16x32xbf16>
      %37 = arith.extf %36 : vector<16x32xbf16> to vector<16x32xf32>
      %38 = arith.mulf %35, %37 : vector<16x32xf32>
      %cst_25 = arith.constant dense<0.000000e+00> : vector<16xf32>
      %39 = vector.multi_reduction <add>, %38, %cst_25 [1] : vector<16x32xf32> to vector<16xf32>
      %40 = vector.shape_cast %39 : vector<16xf32> to vector<16x1xf32>
      %c0_26 = arith.constant 0 : index
      %c0_27 = arith.constant 0 : index
      %41 = vector.load %arg6[%c0_26, %c0_27] : memref<16x1xf32, #tpu.memory_space<vmem>>, vector<16x1xf32>
      %42 = arith.addf %40, %41 : vector<16x1xf32>
      %c0_28 = arith.constant 0 : index
      %c0_29 = arith.constant 0 : index
      %43 = vector.load %arg13[%c0_28, %c0_29] : memref<16x1xf32, #tpu.memory_space<vmem>>, vector<16x1xf32>
      tpu.vector_store %arg13[%c0_28, %c0_29], %42 {strides = array<i32>} : memref<16x1xf32, #tpu.memory_space<vmem>>, vector<16x1xf32>,
      %44 = arith.truncf %35 : vector<16x32xf32> to vector<16x32xbf16>
      %c0_30 = arith.constant 0 : index
      %c0_31 = arith.constant 0 : index
      %45 = vector.load %arg12[%c0_30, %c0_31] : memref<16x32xbf16, #tpu.memory_space<vmem>>, vector<16x32xbf16>
      tpu.vector_store %arg12[%c0_30, %c0_31], %44 {strides = array<i32>} : memref<16x32xbf16, #tpu.memory_space<vmem>>, vector<16x32xbf16>,
    } else {
    }
    %c0 = arith.constant 0 : index
    %c0_1 = arith.constant 0 : index
    %3 = vector.load %arg12[%c0, %c0_1] : memref<16x32xbf16, #tpu.memory_space<vmem>>, vector<16x32xbf16>
    %c0_2 = arith.constant 0 : index
    %c0_3 = arith.constant 0 : index
    %4 = vector.load %arg7[%c0_2, %c0_3] : memref<32x128xbf16, #tpu.memory_space<vmem>>, vector<32x128xbf16>
    %cst = arith.constant dense<0.000000e+00> : vector<16x128xf32>
    %5 = tpu.matmul %3, %4, %cst {dimension_numbers = #tpu.dot_dimension_numbers<[1], [0], [0], [1], [0, 0, 1, 1], [], []>} : vector<16x32xbf16>, vector<32x128xbf16>, vector<16x128xf32> -> vector<16x128xf32>
    %c0_4 = arith.constant 0 : index
    %c0_5 = arith.constant 0 : index
    %6 = vector.load %arg8[%c0_4, %c0_5] : memref<1x128xf32, #tpu.memory_space<vmem>>, vector<1x128xf32>
    %7 = vector.broadcast %6 : vector<1x128xf32> to vector<16x128xf32>
    %8 = arith.addf %5, %7 : vector<16x128xf32>
    %c128_i32 = arith.constant 128 : i32
    %9 = arith.muli %arg1, %c128_i32 : i32
    %10 = tpu.iota {dimensions = array<i32: 1>} : vector<16x128xi32>
    %11 = vector.broadcast %9 : i32 to vector<16x128xi32>
    %12 = arith.addi %11, %10 : vector<16x128xi32>
    %c0_6 = arith.constant 0 : index
    %c0_7 = arith.constant 0 : index
    %13 = vector.load %arg9[%c0_6, %c0_7] : memref<16x1xi32, #tpu.memory_space<vmem>>, vector<16x1xi32>
    %c0_8 = arith.constant 0 : index
    %c0_9 = arith.constant 0 : index
    %14 = vector.load %arg10[%c0_8, %c0_9] : memref<1x128xi32, #tpu.memory_space<vmem>>, vector<1x128xi32>
    %15 = vector.broadcast %13 : vector<16x1xi32> to vector<16x128xi32>
    %16 = vector.broadcast %14 : vector<1x128xi32> to vector<16x128xi32>
    %17 = arith.cmpi eq, %15, %16 : vector<16x128xi32>
    %c65_i32 = arith.constant 65 : i32
    %18 = vector.broadcast %c65_i32 : i32 to vector<16x128xi32>
    %19 = arith.cmpi sge, %12, %18 : vector<16x128xi32>
    %20 = arith.ori %17, %19 : vector<16x128xi1>
    %cst_10 = arith.constant -9.99999993E+36 : f32
    %21 = vector.broadcast %cst_10 : f32 to vector<16x128xf32>
    %22 = arith.select %20, %21, %8 : vector<16x128xi1>, vector<16x128xf32>
    %c0_i32_11 = arith.constant 0 : i32
    %23 = vector.broadcast %c0_i32_11 : i32 to vector<16x128xi32>
    %24 = arith.cmpi eq, %12, %23 : vector<16x128xi32>
    %c0_12 = arith.constant 0 : index
    %c0_13 = arith.constant 0 : index
    %25 = vector.load %arg13[%c0_12, %c0_13] : memref<16x1xf32, #tpu.memory_space<vmem>>, vector<16x1xf32>
    %26 = vector.shape_cast %25 : vector<16x1xf32> to vector<16x1xf32>
    %27 = vector.broadcast %26 : vector<16x1xf32> to vector<16x128xf32>
    %28 = arith.select %24, %27, %22 : vector<16x128xi1>, vector<16x128xf32>
    %c0_14 = arith.constant 0 : index
    %c0_15 = arith.constant 0 : index
    %29 = vector.load %arg11[%c0_14, %c0_15] : memref<16x128xf32, #tpu.memory_space<vmem>>, vector<16x128xf32>
    tpu.vector_store %arg11[%c0_14, %c0_15], %28 {strides = array<i32>} : memref<16x128xf32, #tpu.memory_space<vmem>>, vector<16x128xf32>,
    return
  }
  func.func @transform_0(%arg0: i32, %arg1: i32) -> (i32, i32) {
    %c0_i32 = arith.constant 0 : i32
    %c0_i32_0 = arith.constant 0 : i32
    return %arg0, %c0_i32 : i32, i32
  }
  func.func @transform_1(%arg0: i32, %arg1: i32) -> (i32, i32) {
    %c0_i32 = arith.constant 0 : i32
    %c0_i32_0 = arith.constant 0 : i32
    %c0_i32_1 = arith.constant 0 : i32
    return %c0_i32, %c0_i32_0 : i32, i32
  }
  func.func @transform_2(%arg0: i32, %arg1: i32) -> (i32, i32) {
    %c0_i32 = arith.constant 0 : i32
    %c0_i32_0 = arith.constant 0 : i32
    %c0_i32_1 = arith.constant 0 : i32
    return %c0_i32, %c0_i32_0 : i32, i32
  }
  func.func @transform_3(%arg0: i32, %arg1: i32) -> (i32, i32) {
    %c0_i32 = arith.constant 0 : i32
    %c0_i32_0 = arith.constant 0 : i32
    return %arg0, %c0_i32 : i32, i32
  }
  func.func @transform_4(%arg0: i32, %arg1: i32) -> (i32, i32) {
    %c0_i32 = arith.constant 0 : i32
    %c0_i32_0 = arith.constant 0 : i32
    return %arg0, %c0_i32 : i32, i32
  }
  func.func @transform_5(%arg0: i32, %arg1: i32) -> (i32, i32) {
    %c0_i32 = arith.constant 0 : i32
    %c0_i32_0 = arith.constant 0 : i32
    return %c0_i32, %arg1 : i32, i32
  }
  func.func @transform_6(%arg0: i32, %arg1: i32) -> (i32, i32) {
    %c0_i32 = arith.constant 0 : i32
    %c0_i32_0 = arith.constant 0 : i32
    return %c0_i32, %arg1 : i32, i32
  }
  func.func @transform_7(%arg0: i32, %arg1: i32) -> (i32, i32) {
    %c0_i32 = arith.constant 0 : i32
    %c0_i32_0 = arith.constant 0 : i32
    return %arg0, %c0_i32 : i32, i32
  }
  func.func @transform_8(%arg0: i32, %arg1: i32) -> (i32, i32) {
    %c0_i32 = arith.constant 0 : i32
    %c0_i32_0 = arith.constant 0 : i32
    return %c0_i32, %arg1 : i32, i32
  }
  func.func @transform_9(%arg0: i32, %arg1: i32) -> (i32, i32) {
    %c0_i32 = arith.constant 0 : i32
    return %arg0, %arg1 : i32, i32
  }
}

module attributes {stable_mosaic.version = 11 : i64} {
  func.func @kernel(%arg0: i32, %arg1: i32, %arg2: memref<16x24xbf16, #tpu.memory_space<vmem>>, %arg3: memref<24x32xbf16, #tpu.memory_space<vmem>>, %arg4: memref<1x32xf32, #tpu.memory_space<vmem>>, %arg5: memref<16x32xbf16, #tpu.memory_space<vmem>>, %arg6: memref<16x1xf32, #tpu.memory_space<vmem>>, %arg7: memref<32x128xbf16, #tpu.memory_space<vmem>>, %arg8: memref<1x128xf32, #tpu.memory_space<vmem>>, %arg9: memref<16x1xi32, #tpu.memory_space<vmem>>, %arg10: memref<1x128xi32, #tpu.memory_space<vmem>>, %arg11: memref<16x128xf32, #tpu.memory_space<vmem>>, %arg12: memref<16x32xbf16, #tpu.memory_space<vmem>>, %arg13: memref<16x1xf32, #tpu.memory_space<vmem>>) attributes {dimension_semantics = [#tpu.dimension_semantics<parallel>, #tpu.dimension_semantics<arbitrary>], iteration_bounds = array<i64: 1, 1>, scalar_prefetch = 0 : i64, scratch_operands = 2 : i64, tpu.core_type = #tpu.core_type<tc>, window_params = [{transform_indices = @transform_0, window_bounds = array<i64: 16, 24>}, {pipeline_mode = #tpu.pipeline_mode<synchronous>, transform_indices = @transform_1, window_bounds = array<i64: 24, 32>}, {pipeline_mode = #tpu.pipeline_mode<synchronous>, transform_indices = @transform_2, window_bounds = array<i64: 1, 32>}, {transform_indices = @transform_3, window_bounds = array<i64: 16, 32>}, {transform_indices = @transform_4, window_bounds = array<i64: 16, 1>}, {transform_indices = @transform_5, window_bounds = array<i64: 32, 128>}, {transform_indices = @transform_6, window_bounds = array<i64: 1, 128>}, {transform_indices = @transform_7, window_bounds = array<i64: 16, 1>}, {transform_indices = @transform_8, window_bounds = array<i64: 1, 128>}, {transform_indices = @transform_9, window_bounds = array<i64: 16, 128>}]} {
    %c0_i32 = arith.constant 0 : i32
    %0 = arith.cmpi eq, %arg1, %c0_i32 : i32
    %1 = arith.extui %0 : i1 to i32
    %c0_i32_0 = arith.constant 0 : i32
    %2 = arith.cmpi ne, %1, %c0_i32_0 : i32
    scf.if %2 {
      %c0_16 = arith.constant 0 : index
      %c0_17 = arith.constant 0 : index
      %30 = vector.load %arg2[%c0_16, %c0_17] : memref<16x24xbf16, #tpu.memory_space<vmem>>, vector<16x24xbf16>
      %c0_18 = arith.constant 0 : index
      %c0_19 = arith.constant 0 : index
      %31 = vector.load %arg3[%c0_18, %c0_19] : memref<24x32xbf16, #tpu.memory_space<vmem>>, vector<24x32xbf16>
      %cst_20 = arith.constant dense<0.000000e+00> : vector<16x32xf32>
      %32 = tpu.matmul %30, %31, %cst_20 {dimension_numbers = #tpu.dot_dimension_numbers<[1], [0], [0], [1], [0, 0, 1, 1], [], []>} : vector<16x24xbf16>, vector<24x32xbf16>, vector<16x32xf32> -> vector<16x32xf32>
      %c0_21 = arith.constant 0 : index
      %c0_22 = arith.constant 0 : index
      %33 = vector.load %arg4[%c0_21, %c0_22] : memref<1x32xf32, #tpu.memory_space<vmem>>, vector<1x32xf32>
      %34 = vector.broadcast %33 : vector<1x32xf32> to vector<16x32xf32>
      %35 = arith.addf %32, %34 : vector<16x32xf32>
      %c0_23 = arith.constant 0 : index
      %c0_24 = arith.constant 0 : index
      %36 = vector.load %arg5[%c0_23, %c0_24] : memref<16x32xbf16, #tpu.memory_space<vmem>>, vector<16x32xbf16>
      %37 = arith.extf %36 : vector<16x32xbf16> to vector<16x32xf32>
      %38 = arith.mulf %35, %37 : vector<16x32xf32>
      %cst_25 = arith.constant dense<0.000000e+00> : vector<16xf32>
      %39 = vector.multi_reduction <add>, %38, %cst_25 [1] : vector<16x32xf32> to vector<16xf32>
      %40 = vector.shape_cast %39 : vector<16xf32> to vector<16x1xf32>
      %c0_26 = arith.constant 0 : index
      %c0_27 = arith.constant 0 : index
      %41 = vector.load %arg6[%c0_26, %c0_27] : memref<16x1xf32, #tpu.memory_space<vmem>>, vector<16x1xf32>
      %42 = arith.addf %40, %41 : vector<16x1xf32>
      %c0_28 = arith.constant 0 : index
      %c0_29 = arith.constant 0 : index
      %43 = vector.load %arg13[%c0_28, %c0_29] : memref<16x1xf32, #tpu.memory_space<vmem>>, vector<16x1xf32>
      tpu.vector_store %arg13[%c0_28, %c0_29], %42 {strides = array<i32>} : memref<16x1xf32, #tpu.memory_space<vmem>>, vector<16x1xf32>,
      %44 = arith.truncf %35 : vector<16x32xf32> to vector<16x32xbf16>
      %c0_30 = arith.constant 0 : index
      %c0_31 = arith.constant 0 : index
      %45 = vector.load %arg12[%c0_30, %c0_31] : memref<16x32xbf16, #tpu.memory_space<vmem>>, vector<16x32xbf16>
      tpu.vector_store %arg12[%c0_30, %c0_31], %44 {strides = array<i32>} : memref<16x32xbf16, #tpu.memory_space<vmem>>, vector<16x32xbf16>,
    } else {
    }
    %c0 = arith.constant 0 : index
    %c0_1 = arith.constant 0 : index
    %3 = vector.load %arg12[%c0, %c0_1] : memref<16x32xbf16, #tpu.memory_space<vmem>>, vector<16x32xbf16>
    %c0_2 = arith.constant 0 : index
    %c0_3 = arith.constant 0 : index
    %4 = vector.load %arg7[%c0_2, %c0_3] : memref<32x128xbf16, #tpu.memory_space<vmem>>, vector<32x128xbf16>
    %cst = arith.constant dense<0.000000e+00> : vector<16x128xf32>
    %5 = tpu.matmul %3, %4, %cst {dimension_numbers = #tpu.dot_dimension_numbers<[1], [0], [0], [1], [0, 0, 1, 1], [], []>} : vector<16x32xbf16>, vector<32x128xbf16>, vector<16x128xf32> -> vector<16x128xf32>
    %c0_4 = arith.constant 0 : index
    %c0_5 = arith.constant 0 : index
    %6 = vector.load %arg8[%c0_4, %c0_5] : memref<1x128xf32, #tpu.memory_space<vmem>>, vector<1x128xf32>
    %7 = vector.broadcast %6 : vector<1x128xf32> to vector<16x128xf32>
    %8 = arith.addf %5, %7 : vector<16x128xf32>
    %c128_i32 = arith.constant 128 : i32
    %9 = arith.muli %arg1, %c128_i32 : i32
    %10 = tpu.iota {dimensions = array<i32: 1>} : vector<16x128xi32>
    %11 = vector.broadcast %9 : i32 to vector<16x128xi32>
    %12 = arith.addi %11, %10 : vector<16x128xi32>
    %c0_6 = arith.constant 0 : index
    %c0_7 = arith.constant 0 : index
    %13 = vector.load %arg9[%c0_6, %c0_7] : memref<16x1xi32, #tpu.memory_space<vmem>>, vector<16x1xi32>
    %c0_8 = arith.constant 0 : index
    %c0_9 = arith.constant 0 : index
    %14 = vector.load %arg10[%c0_8, %c0_9] : memref<1x128xi32, #tpu.memory_space<vmem>>, vector<1x128xi32>
    %15 = vector.broadcast %13 : vector<16x1xi32> to vector<16x128xi32>
    %16 = vector.broadcast %14 : vector<1x128xi32> to vector<16x128xi32>
    %17 = arith.cmpi eq, %15, %16 : vector<16x128xi32>
    %c65_i32 = arith.constant 65 : i32
    %18 = vector.broadcast %c65_i32 : i32 to vector<16x128xi32>
    %19 = arith.cmpi sge, %12, %18 : vector<16x128xi32>
    %20 = arith.ori %17, %19 : vector<16x128xi1>
    %cst_10 = arith.constant -9.99999993E+36 : f32
    %21 = vector.broadcast %cst_10 : f32 to vector<16x128xf32>
    %22 = arith.select %20, %21, %8 : vector<16x128xi1>, vector<16x128xf32>
    %c0_i32_11 = arith.constant 0 : i32
    %23 = vector.broadcast %c0_i32_11 : i32 to vector<16x128xi32>
    %24 = arith.cmpi eq, %12, %23 : vector<16x128xi32>
    %c0_12 = arith.constant 0 : index
    %c0_13 = arith.constant 0 : index
    %25 = vector.load %arg13[%c0_12, %c0_13] : memref<16x1xf32, #tpu.memory_space<vmem>>, vector<16x1xf32>
    %26 = vector.shape_cast %25 : vector<16x1xf32> to vector<16x1xf32>
    %27 = vector.broadcast %26 : vector<16x1xf32> to vector<16x128xf32>
    %28 = arith.select %24, %27, %22 : vector<16x128xi1>, vector<16x128xf32>
    %c0_14 = arith.constant 0 : index
    %c0_15 = arith.constant 0 : index
    %29 = vector.load %arg11[%c0_14, %c0_15] : memref<16x128xf32, #tpu.memory_space<vmem>>, vector<16x128xf32>
    tpu.vector_store %arg11[%c0_14, %c0_15], %28 {strides = array<i32>} : memref<16x128xf32, #tpu.memory_space<vmem>>, vector<16x128xf32>,
    return
  }
  func.func @transform_0(%arg0: i32, %arg1: i32) -> (i32, i32) {
    %c0_i32 = arith.constant 0 : i32
    %c0_i32_0 = arith.constant 0 : i32
    return %arg0, %c0_i32 : i32, i32
  }
  func.func @transform_1(%arg0: i32, %arg1: i32) -> (i32, i32) {
    %c0_i32 = arith.constant 0 : i32
    %c0_i32_0 = arith.constant 0 : i32
    %c0_i32_1 = arith.constant 0 : i32
    return %c0_i32, %c0_i32_0 : i32, i32
  }
  func.func @transform_2(%arg0: i32, %arg1: i32) -> (i32, i32) {
    %c0_i32 = arith.constant 0 : i32
    %c0_i32_0 = arith.constant 0 : i32
    %c0_i32_1 = arith.constant 0 : i32
    return %c0_i32, %c0_i32_0 : i32, i32
  }
  func.func @transform_3(%arg0: i32, %arg1: i32) -> (i32, i32) {
    %c0_i32 = arith.constant 0 : i32
    %c0_i32_0 = arith.constant 0 : i32
    return %arg0, %c0_i32 : i32, i32
  }
  func.func @transform_4(%arg0: i32, %arg1: i32) -> (i32, i32) {
    %c0_i32 = arith.constant 0 : i32
    %c0_i32_0 = arith.constant 0 : i32
    return %arg0, %c0_i32 : i32, i32
  }
  func.func @transform_5(%arg0: i32, %arg1: i32) -> (i32, i32) {
    %c0_i32 = arith.constant 0 : i32
    %c0_i32_0 = arith.constant 0 : i32
    return %c0_i32, %arg1 : i32, i32
  }
  func.func @transform_6(%arg0: i32, %arg1: i32) -> (i32, i32) {
    %c0_i32 = arith.constant 0 : i32
    %c0_i32_0 = arith.constant 0 : i32
    return %c0_i32, %arg1 : i32, i32
  }
  func.func @transform_7(%arg0: i32, %arg1: i32) -> (i32, i32) {
    %c0_i32 = arith.constant 0 : i32
    %c0_i32_0 = arith.constant 0 : i32
    return %arg0, %c0_i32 : i32, i32
  }
  func.func @transform_8(%arg0: i32, %arg1: i32) -> (i32, i32) {
    %c0_i32 = arith.constant 0 : i32
    %c0_i32_0 = arith.constant 0 : i32
    return %c0_i32, %arg1 : i32, i32
  }
  func.func @transform_9(%arg0: i32, %arg1: i32) -> (i32, i32) {
    %c0_i32 = arith.constant 0 : i32
    return %arg0, %arg1 : i32, i32
  }
}

</mosaic_0001>

<bundles_post_ra>
// kernel: tpu_custom_call.1
= control target key start
LH: loop header
LB: loop body
LE: loop exit
PB: predicated region body
PF: predicated region fallthrough
CT: control target
= control target key end

     0   :  { %14 = vsyncpa [#allocation5], 0  ;;  %s535_s0 = inlined_call_operand.hbm [shape: bf16[16,24], index: 0, kind: input, shape index: {}]   ;;  %s536_s1 = inlined_call_operand.vmem [shape: bf16[24,32], index: 1, kind: input, shape index: {}]   ;;  %s537_s2 = inlined_call_operand.hbm [shape: f32[1,32], index: 2, kind: input, shape index: {}]   ;;  %s538_s3 = inlined_call_operand.vmem [shape: bf16[16,32], index: 3, kind: input, shape index: {}]   ;;  %s539_s4 = inlined_call_operand.vmem [shape: f32[16,1], index: 4, kind: input, shape index: {}]   ;;  %s540_s5 = inlined_call_operand.vmem [shape: bf16[32,128], index: 5, kind: input, shape index: {}]   ;;  %s541_s6 = inlined_call_operand.vmem [shape: f32[1,128], index: 6, kind: input, shape index: {}]   ;;  %s542_s7 = inlined_call_operand.vmem [shape: s32[16,1], index: 7, kind: input, shape index: {}]   ;;  %s543_s8 = inlined_call_operand.vmem [shape: s32[1,128], index: 8, kind: input, shape index: {}]   ;;  %s544_s9 = inlined_call_operand.hbm [shape: f32[16,128], index: 9, kind: output, shape index: {}]  }
   0x1   :  { %15 = vsyncpa [#allocation8], 0 }
   0x2   :  { %16 = vsyncpa [#allocation6], 0  ;;  %s430_s30 = smov [#allocation4]  }
   0x3   :  { %s22_s10 = sshll.u32 %s430_s30, 4  ;;  %s23_s10 = int_to_ptr.vmem [resolvable:$true] %s22_s10 }
   0x4   :  { %s372_s11 = scalar_lea.vmem %s23_s10, 128  ;;  %p377_p1 = scmp.lt.s32.totalorder %s23_s10, %s23_s10 }
   0x5   :  { %p373_p0 = scmp.ne.s32.totalorder %s23_s10, %s372_s11  ;;  %p378_p2 = scmp.lt.s32.totalorder %s372_s11, %s372_s11 }
   0x7   :  { %p379_p3 = por %p378_p2, %p377_p1 }
   0x9   :  { %p380_p4 = pnand %p379_p3, %p373_p0 }
   0xb   :  { %383 = shalt.err (!%p380_p4)
}
   0xc   :  { %s431_s12 = smov 64   ;;  %s432_s13 = smov 4  }
   0xd   :  { %28 = dma.hbm_to_vmem [thread:$0]  %s535_s0, 128, %s23_s10, [#allocation5], %s431_s12, %s431_s12, %s432_s13  }
   0xe   :  { %s433_s16 = smov [#allocation7]  }
   0xf   :  { %s37_s17 = sshll.u32 %s433_s16, 4  ;;  %s38_s17 = int_to_ptr.vmem [resolvable:$true] %s37_s17 }
  0x10   :  { %s392_s18 = scalar_lea.vmem %s38_s17, 16  ;;  %s396_s19 = scalar_lea.vmem %s38_s17, 32 }
  0x11   :  { %p393_p5 = scmp.ne.s32.totalorder %s38_s17, %s392_s18  ;;  %p397_p6 = scmp.lt.s32.totalorder %s38_s17, %s38_s17 }
  0x12   :  { %p398_p7 = scmp.lt.s32.totalorder %s396_s19, %s392_s18 }
  0x14   :  { %p399_p8 = por %p398_p7, %p397_p6 }
  0x16   :  { %p400_p9 = pnand %p399_p8, %p393_p5 }
  0x18   :  { %403 = shalt.err (!%p400_p9)
}
  0x19   :  { %40 = dma.hbm_to_vmem [thread:$0]  %s537_s2, 16, %s38_s17, [#allocation8]  }
  0x1a   :  { %424 = dma.done.wait [#allocation5], 128  }
  0x1b   :  { %425 = vsyncadd [#allocation5], 4294967168 }
  0x1c   :  { %426 = dma.done.wait [#allocation8], 16  }
  0x1d   :  { %427 = vsyncadd [#allocation8], 4294967280  ;;  %v434_v0 = vmov 0.0   ;;  %vm435_vm0 = vmmov 0   ;;  %vm94_vm1 = vcmask 1043456   ;;  %v359_v3 = vld [vmem:[%s536_s1] sm:$0xff]   ;;  %v246_v39 = vlaneseq }
  0x1e   :  { %330 = vmatprep.subr.bf16.mxu0 %v434_v0  ;;  %334 = vmatprep.mubr.msk.bf16.mxu0 %vm435_vm0, %v434_v0  ;;  %v358_v1 = vld [vmem:[%s536_s1 + $0x8] ss:$0 sps:$4 sm:$0xff]   ;;  %v360_v4 = vld [vmem:[#allocation4] sm:$0xff]   ;;  %vm90_vm2 = vcmask 195584   ;;  %v362_v6 = vld [vmem:[%s540_s5] sm:$0xff]   ;;  %v436_v8 = vmov 0  }
  0x1f   :  { %338 = vmatprep.subr.bf16.mxu1 %v434_v0  ;;  %342 = vmatprep.mubr.msk.bf16.mxu1 %vm435_vm0, %v434_v0  ;;  %v96_v2 = vsel %vm94_vm1, %v358_v1, 0  ;;  %v361_v5 = vld [vmem:[%s540_s5 + $0x8] sm:$0xff]   ;;  %v250_v7 = vld [vmem:[%s542_s7] sm:$0xff]  ;;  %vm167_vm3 = vcmask 257024   ;;  %vm145_vm4 = vcmask 261120   ;;  %vm156_vm5 = vcmask 7168  }
  0x20   :  { %331 = vmatpush3.bf16.msra.mxu0 %v96_v2  ;;  %339 = vmatpush3.bf16.msra.mxu1 %v361_v5  ;;  %v251_v9 = vld [vmem:[%s542_s7 + $0x8] sm:$0xff]  ;;  %v321_v10 = vld [vmem:[%s538_s3] sm:$0xff]   ;;  %v247_v41 = vand.u32 127, %v246_v39  ;;  %s437_s16 = smov [#allocation9]  }
  0x21   :  { %332 = vmatprep.subr.bf16.mxu0 %v434_v0  ;;  %340 = vmatprep.subr.bf16.mxu1 %v434_v0  ;;  %v305_v11 = vld [vmem:[#allocation7] ss:$0 sm:$0xff]  ;;  %v322_v12 = vunpack.c.l.bf16 %v321_v10  ;;  %v323_v18 = vunpack.c.h.bf16 %v321_v10  ;;  %v153_v30 = vld [vmem:[%s539_s4 + $0x8] sm:$0xff]  ;;  %s292_s17 = sshll.u32 %s437_s16, 4  ;;  %s293_s17 = int_to_ptr.vmem [resolvable:$true] %s292_s17 }
  0x22   :  { %356 = vset.pattern.permute.xlu1 %v436_v8  ;;  %357 = vset.pattern.permute.xlu0 %v436_v8  ;;  %v152_v27 = vld [vmem:[%s539_s4] sm:$0xff]  ;;  %vm265_vm6 = vcmp.ge.s32.totalorder %v247_v41, 65  ;;  %vm270_vm10 = vcmp.eq.s32.totalorder %v247_v41, 0  ;;  %p409_p11 = scmp.lt.s32.totalorder %s293_s17, %s293_s17 }
  0x23   :  { %254 = vperm.xlu1 %356, %v250_v7   ;;  %v317_v42 = vld [vmem:[%s543_s8] ss:$0 sm:$0xff] }
  0x24   :  { %333 = vmatpush3.bf16.msra.mxu0 %v359_v3  ;;  %341 = vmatpush3.bf16.msra.mxu1 %v362_v6  ;;  %v312_v43 = vld [vmem:[%s541_s6] ss:$0 sm:$0xff]  ;;  %s404_s6 = scalar_lea.vmem %s293_s17, 256 }
  0x25   :  { %p405_p10 = scmp.ne.s32.totalorder %s293_s17, %s404_s6  ;;  %p410_p12 = scmp.lt.s32.totalorder %s404_s6, %s404_s6 }
  0x27   :  { %335 = vmatmul.mubr.msk.bf16.vlgmr.msra.gmra.mxu0 %vm90_vm2, %v360_v4  ;;  %257 = vperm.xlu1 %356, %v251_v9   ;;  %p411_p13 = por %p410_p12, %p409_p11 }
  0x29   :  { %p412_p0 = pnand %p411_p13, %p405_p10 }
  0x9e   :  { %v255_v40 = vpop.permute.xlu1 %254 }
  0x9f   :  { %vm263_vm7 = vcmp.eq.s32.totalorder %v255_v40, %v317_v42 }
  0xa0   :  { %vm266_vm8 = vmor %vm263_vm7, %vm265_vm6 }
  0xa2   :  { %v258_v44 = vpop.permute.xlu1 %257 }
  0xa3   :  { %vm264_vm9 = vcmp.eq.s32.totalorder %v258_v44, %v317_v42 }
  0xa4   :  { %vm267_vm11 = vmor %vm264_vm9, %vm265_vm6 }
  0xe7   :  { %v132_v13 = vpop.f32.mrf.mxu0 }
  0xe8   :  { %v133_v14 = vadd.f32 %v305_v11, %v132_v13 }
  0xe9   :  { %v336_v15 = vpop.f32.mrf.mxu0 }
  0xea   :  { %v318_v16 = vpack.c.bf16 %v133_v14, %v133_v14  ;;  %v143_v17 = vmul.f32 %v322_v12, %v133_v14 }
  0xeb   :  { %v135_v19 = vpop.f32.mrf.mxu0 }
  0xec   :  { %168 = vst.msk [vmem:[#allocation2] sm:$0xf] %vm167_vm3, %v318_v16  ;;  %v136_v20 = vadd.f32 %v305_v11, %v135_v19  ;;  %v146_v21 = vsel %vm145_vm4, %v143_v17, 0.0 }
  0xed   :  { %147 = vadd.xlane.f32.xlu0 %v146_v21  ;;  %v337_v22 = vpop.f32.mrf.mxu0 }
  0xee   :  { %v319_v23 = vpack.c.bf16 %v136_v20, %v136_v20  ;;  %v144_v24 = vmul.f32 %v323_v18, %v136_v20 }
  0xf0   :  { %169 = vst.msk [vmem:[#allocation2 + $0x4] sm:$0xf] %vm167_vm3, %v319_v23  ;;  %v149_v25 = vsel %vm145_vm4, %v144_v24, 0.0 }
  0xf1   :  { %150 = vadd.xlane.f32.xlu0 %v149_v25 }
  0xf7   :  { %v363_v26 = vld [vmem:[#allocation2] sm:$0xff]  }
  0xf8   :  { %343 = vmatmul.mubr.msk.bf16.vlgmr.msra.gmra.mxu1 %vm145_vm4, %v363_v26 }
 0x176   :  { %v148_v28 = vpop.xlane.xlu0 %147 }
 0x177   :  { %v154_v29 = vadd.f32 %v152_v27, %v148_v28 }
 0x179   :  { %157 = vst.msk [vmem:[#allocation3] sm:$0xff] %vm156_vm5, %v154_v29 }
 0x17a   :  { %v151_v31 = vpop.xlane.xlu0 %150 }
 0x17b   :  { %v155_v32 = vadd.f32 %v153_v30, %v151_v31 }
 0x17d   :  { %158 = vst.msk [vmem:[#allocation3 + $0x8] sm:$0xff] %vm156_vm5, %v155_v32 }
 0x180   :  { %v271_v33 = vld [vmem:[#allocation3] sm:$0xff] }
 0x181   :  { %275 = vperm.xlu0 %357, %v271_v33  }
 0x184   :  { %v272_v34 = vld [vmem:[#allocation3 + $0x8] sm:$0xff] }
 0x185   :  { %280 = vperm.xlu1 %356, %v272_v34  }
 0x1b8   :  { %v238_v35 = vpop.f32.mrf.mxu1 }
 0x1b9   :  { %v239_v45 = vadd.f32 %v312_v43, %v238_v35 }
 0x1ba   :  { %v344_v36 = vpop.f32.mrf.mxu1 }
 0x1bb   :  { %v268_v46 = vsel %vm266_vm8, -1e+37, %v239_v45 }
 0x1bc   :  { %v241_v37 = vpop.f32.mrf.mxu1 }
 0x1bd   :  { %v242_v47 = vadd.f32 %v312_v43, %v241_v37 }
 0x1be   :  { %v345_v38 = vpop.f32.mrf.mxu1 }
 0x1bf   :  { %v269_v50 = vsel %vm267_vm11, -1e+37, %v242_v47 }
 0x1fc   :  { %v276_v48 = vpop.permute.xlu0 %275 }
 0x1fd   :  { %v283_v49 = vsel %vm270_vm10, %v276_v48, %v268_v46 }
 0x1fe   :  { %285 = vst [vmem:[#allocation9] sm:$0xff] %v283_v49 }
 0x200   :  { %v281_v51 = vpop.permute.xlu1 %280 }
 0x201   :  { %v284_v52 = vsel %vm270_vm10, %v281_v51, %v269_v50 }
 0x202   :  { %286 = vst [vmem:[#allocation9 + $0x8] sm:$0xff] %v284_v52 }
 0x203   :  { %415 = shalt.err (!%p412_p0)
}
 0x204   :  { %s438_s8 = smov 128   ;;  %s439_s18 = smov 8  }
 0x205   :  { %298 = dma.vmem_to_hbm [thread:$0]  %s293_s17, 256, %s544_s9, [#allocation6], %s438_s8, %s438_s8, %s439_s18  }
 0x206   :  { %428 = dma.done.wait [#allocation6], 256  }
 0x207   :  { %429 = vsyncadd [#allocation6], 4294967040 }
 0x208   :  { %302 = vsyncpa [#allocation5], 1 }
 0x209   :  { %303 = vsyncpa [#allocation8], 1 }
 0x20a   :  { %304 = vsyncpa [#allocation6], 1 }

// kernel: tpu_custom_call.1
= control target key start
LH: loop header
LB: loop body
LE: loop exit
PB: predicated region body
PF: predicated region fallthrough
CT: control target
= control target key end

     0   :  { %14 = vsyncpa [#allocation5], 0  ;;  %s535_s0 = inlined_call_operand.hbm [shape: bf16[16,24], index: 0, kind: input, shape index: {}]   ;;  %s536_s1 = inlined_call_operand.vmem [shape: bf16[24,32], index: 1, kind: input, shape index: {}]   ;;  %s537_s2 = inlined_call_operand.hbm [shape: f32[1,32], index: 2, kind: input, shape index: {}]   ;;  %s538_s3 = inlined_call_operand.vmem [shape: bf16[16,32], index: 3, kind: input, shape index: {}]   ;;  %s539_s4 = inlined_call_operand.vmem [shape: f32[16,1], index: 4, kind: input, shape index: {}]   ;;  %s540_s5 = inlined_call_operand.vmem [shape: bf16[32,128], index: 5, kind: input, shape index: {}]   ;;  %s541_s6 = inlined_call_operand.vmem [shape: f32[1,128], index: 6, kind: input, shape index: {}]   ;;  %s542_s7 = inlined_call_operand.vmem [shape: s32[16,1], index: 7, kind: input, shape index: {}]   ;;  %s543_s8 = inlined_call_operand.vmem [shape: s32[1,128], index: 8, kind: input, shape index: {}]   ;;  %s544_s9 = inlined_call_operand.hbm [shape: f32[16,128], index: 9, kind: output, shape index: {}]  }
   0x1   :  { %15 = vsyncpa [#allocation8], 0 }
   0x2   :  { %16 = vsyncpa [#allocation6], 0  ;;  %s430_s30 = smov [#allocation4]  }
   0x3   :  { %s22_s10 = sshll.u32 %s430_s30, 4  ;;  %s23_s10 = int_to_ptr.vmem [resolvable:$true] %s22_s10 }
   0x4   :  { %s372_s11 = scalar_lea.vmem %s23_s10, 128  ;;  %p377_p1 = scmp.lt.s32.totalorder %s23_s10, %s23_s10 }
   0x5   :  { %p373_p0 = scmp.ne.s32.totalorder %s23_s10, %s372_s11  ;;  %p378_p2 = scmp.lt.s32.totalorder %s372_s11, %s372_s11 }
   0x7   :  { %p379_p3 = por %p378_p2, %p377_p1 }
   0x9   :  { %p380_p4 = pnand %p379_p3, %p373_p0 }
   0xb   :  { %383 = shalt.err (!%p380_p4)
}
   0xc   :  { %s431_s12 = smov 64   ;;  %s432_s13 = smov 4  }
   0xd   :  { %28 = dma.hbm_to_vmem [thread:$0]  %s535_s0, 128, %s23_s10, [#allocation5], %s431_s12, %s431_s12, %s432_s13  }
   0xe   :  { %s433_s16 = smov [#allocation7]  }
   0xf   :  { %s37_s17 = sshll.u32 %s433_s16, 4  ;;  %s38_s17 = int_to_ptr.vmem [resolvable:$true] %s37_s17 }
  0x10   :  { %s392_s18 = scalar_lea.vmem %s38_s17, 16  ;;  %s396_s19 = scalar_lea.vmem %s38_s17, 32 }
  0x11   :  { %p393_p5 = scmp.ne.s32.totalorder %s38_s17, %s392_s18  ;;  %p397_p6 = scmp.lt.s32.totalorder %s38_s17, %s38_s17 }
  0x12   :  { %p398_p7 = scmp.lt.s32.totalorder %s396_s19, %s392_s18 }
  0x14   :  { %p399_p8 = por %p398_p7, %p397_p6 }
  0x16   :  { %p400_p9 = pnand %p399_p8, %p393_p5 }
  0x18   :  { %403 = shalt.err (!%p400_p9)
}
  0x19   :  { %40 = dma.hbm_to_vmem [thread:$0]  %s537_s2, 16, %s38_s17, [#allocation8]  }
  0x1a   :  { %424 = dma.done.wait [#allocation5], 128  }
  0x1b   :  { %425 = vsyncadd [#allocation5], 4294967168 }
  0x1c   :  { %426 = dma.done.wait [#allocation8], 16  }
  0x1d   :  { %427 = vsyncadd [#allocation8], 4294967280  ;;  %v434_v0 = vmov 0.0   ;;  %vm435_vm0 = vmmov 0   ;;  %vm94_vm1 = vcmask 1043456   ;;  %v359_v3 = vld [vmem:[%s536_s1] sm:$0xff]   ;;  %v246_v39 = vlaneseq }
  0x1e   :  { %330 = vmatprep.subr.bf16.mxu0 %v434_v0  ;;  %334 = vmatprep.mubr.msk.bf16.mxu0 %vm435_vm0, %v434_v0  ;;  %v358_v1 = vld [vmem:[%s536_s1 + $0x8] ss:$0 sps:$4 sm:$0xff]   ;;  %v360_v4 = vld [vmem:[#allocation4] sm:$0xff]   ;;  %vm90_vm2 = vcmask 195584   ;;  %v362_v6 = vld [vmem:[%s540_s5] sm:$0xff]   ;;  %v436_v8 = vmov 0  }
  0x1f   :  { %338 = vmatprep.subr.bf16.mxu1 %v434_v0  ;;  %342 = vmatprep.mubr.msk.bf16.mxu1 %vm435_vm0, %v434_v0  ;;  %v96_v2 = vsel %vm94_vm1, %v358_v1, 0  ;;  %v361_v5 = vld [vmem:[%s540_s5 + $0x8] sm:$0xff]   ;;  %v250_v7 = vld [vmem:[%s542_s7] sm:$0xff]  ;;  %vm167_vm3 = vcmask 257024   ;;  %vm145_vm4 = vcmask 261120   ;;  %vm156_vm5 = vcmask 7168  }
  0x20   :  { %331 = vmatpush3.bf16.msra.mxu0 %v96_v2  ;;  %339 = vmatpush3.bf16.msra.mxu1 %v361_v5  ;;  %v251_v9 = vld [vmem:[%s542_s7 + $0x8] sm:$0xff]  ;;  %v321_v10 = vld [vmem:[%s538_s3] sm:$0xff]   ;;  %v247_v41 = vand.u32 127, %v246_v39  ;;  %s437_s16 = smov [#allocation9]  }
  0x21   :  { %332 = vmatprep.subr.bf16.mxu0 %v434_v0  ;;  %340 = vmatprep.subr.bf16.mxu1 %v434_v0  ;;  %v305_v11 = vld [vmem:[#allocation7] ss:$0 sm:$0xff]  ;;  %v322_v12 = vunpack.c.l.bf16 %v321_v10  ;;  %v323_v18 = vunpack.c.h.bf16 %v321_v10  ;;  %v153_v30 = vld [vmem:[%s539_s4 + $0x8] sm:$0xff]  ;;  %s292_s17 = sshll.u32 %s437_s16, 4  ;;  %s293_s17 = int_to_ptr.vmem [resolvable:$true] %s292_s17 }
  0x22   :  { %356 = vset.pattern.permute.xlu1 %v436_v8  ;;  %357 = vset.pattern.permute.xlu0 %v436_v8  ;;  %v152_v27 = vld [vmem:[%s539_s4] sm:$0xff]  ;;  %vm265_vm6 = vcmp.ge.s32.totalorder %v247_v41, 65  ;;  %vm270_vm10 = vcmp.eq.s32.totalorder %v247_v41, 0  ;;  %p409_p11 = scmp.lt.s32.totalorder %s293_s17, %s293_s17 }
  0x23   :  { %254 = vperm.xlu1 %356, %v250_v7   ;;  %v317_v42 = vld [vmem:[%s543_s8] ss:$0 sm:$0xff] }
  0x24   :  { %333 = vmatpush3.bf16.msra.mxu0 %v359_v3  ;;  %341 = vmatpush3.bf16.msra.mxu1 %v362_v6  ;;  %v312_v43 = vld [vmem:[%s541_s6] ss:$0 sm:$0xff]  ;;  %s404_s6 = scalar_lea.vmem %s293_s17, 256 }
  0x25   :  { %p405_p10 = scmp.ne.s32.totalorder %s293_s17, %s404_s6  ;;  %p410_p12 = scmp.lt.s32.totalorder %s404_s6, %s404_s6 }
  0x27   :  { %335 = vmatmul.mubr.msk.bf16.vlgmr.msra.gmra.mxu0 %vm90_vm2, %v360_v4  ;;  %257 = vperm.xlu1 %356, %v251_v9   ;;  %p411_p13 = por %p410_p12, %p409_p11 }
  0x29   :  { %p412_p0 = pnand %p411_p13, %p405_p10 }
  0x9e   :  { %v255_v40 = vpop.permute.xlu1 %254 }
  0x9f   :  { %vm263_vm7 = vcmp.eq.s32.totalorder %v255_v40, %v317_v42 }
  0xa0   :  { %vm266_vm8 = vmor %vm263_vm7, %vm265_vm6 }
  0xa2   :  { %v258_v44 = vpop.permute.xlu1 %257 }
  0xa3   :  { %vm264_vm9 = vcmp.eq.s32.totalorder %v258_v44, %v317_v42 }
  0xa4   :  { %vm267_vm11 = vmor %vm264_vm9, %vm265_vm6 }
  0xe7   :  { %v132_v13 = vpop.f32.mrf.mxu0 }
  0xe8   :  { %v133_v14 = vadd.f32 %v305_v11, %v132_v13 }
  0xe9   :  { %v336_v15 = vpop.f32.mrf.mxu0 }
  0xea   :  { %v318_v16 = vpack.c.bf16 %v133_v14, %v133_v14  ;;  %v143_v17 = vmul.f32 %v322_v12, %v133_v14 }
  0xeb   :  { %v135_v19 = vpop.f32.mrf.mxu0 }
  0xec   :  { %168 = vst.msk [vmem:[#allocation2] sm:$0xf] %vm167_vm3, %v318_v16  ;;  %v136_v20 = vadd.f32 %v305_v11, %v135_v19  ;;  %v146_v21 = vsel %vm145_vm4, %v143_v17, 0.0 }
  0xed   :  { %147 = vadd.xlane.f32.xlu0 %v146_v21  ;;  %v337_v22 = vpop.f32.mrf.mxu0 }
  0xee   :  { %v319_v23 = vpack.c.bf16 %v136_v20, %v136_v20  ;;  %v144_v24 = vmul.f32 %v323_v18, %v136_v20 }
  0xf0   :  { %169 = vst.msk [vmem:[#allocation2 + $0x4] sm:$0xf] %vm167_vm3, %v319_v23  ;;  %v149_v25 = vsel %vm145_vm4, %v144_v24, 0.0 }
  0xf1   :  { %150 = vadd.xlane.f32.xlu0 %v149_v25 }
  0xf7   :  { %v363_v26 = vld [vmem:[#allocation2] sm:$0xff]  }
  0xf8   :  { %343 = vmatmul.mubr.msk.bf16.vlgmr.msra.gmra.mxu1 %vm145_vm4, %v363_v26 }
 0x176   :  { %v148_v28 = vpop.xlane.xlu0 %147 }
 0x177   :  { %v154_v29 = vadd.f32 %v152_v27, %v148_v28 }
 0x179   :  { %157 = vst.msk [vmem:[#allocation3] sm:$0xff] %vm156_vm5, %v154_v29 }
 0x17a   :  { %v151_v31 = vpop.xlane.xlu0 %150 }
 0x17b   :  { %v155_v32 = vadd.f32 %v153_v30, %v151_v31 }
 0x17d   :  { %158 = vst.msk [vmem:[#allocation3 + $0x8] sm:$0xff] %vm156_vm5, %v155_v32 }
 0x180   :  { %v271_v33 = vld [vmem:[#allocation3] sm:$0xff] }
 0x181   :  { %275 = vperm.xlu0 %357, %v271_v33  }
 0x184   :  { %v272_v34 = vld [vmem:[#allocation3 + $0x8] sm:$0xff] }
 0x185   :  { %280 = vperm.xlu1 %356, %v272_v34  }
 0x1b8   :  { %v238_v35 = vpop.f32.mrf.mxu1 }
 0x1b9   :  { %v239_v45 = vadd.f32 %v312_v43, %v238_v35 }
 0x1ba   :  { %v344_v36 = vpop.f32.mrf.mxu1 }
 0x1bb   :  { %v268_v46 = vsel %vm266_vm8, -1e+37, %v239_v45 }
 0x1bc   :  { %v241_v37 = vpop.f32.mrf.mxu1 }
 0x1bd   :  { %v242_v47 = vadd.f32 %v312_v43, %v241_v37 }
 0x1be   :  { %v345_v38 = vpop.f32.mrf.mxu1 }
 0x1bf   :  { %v269_v50 = vsel %vm267_vm11, -1e+37, %v242_v47 }
 0x1fc   :  { %v276_v48 = vpop.permute.xlu0 %275 }
 0x1fd   :  { %v283_v49 = vsel %vm270_vm10, %v276_v48, %v268_v46 }
 0x1fe   :  { %285 = vst [vmem:[#allocation9] sm:$0xff] %v283_v49 }
 0x200   :  { %v281_v51 = vpop.permute.xlu1 %280 }
 0x201   :  { %v284_v52 = vsel %vm270_vm10, %v281_v51, %v269_v50 }
 0x202   :  { %286 = vst [vmem:[#allocation9 + $0x8] sm:$0xff] %v284_v52 }
 0x203   :  { %415 = shalt.err (!%p412_p0)
}
 0x204   :  { %s438_s8 = smov 128   ;;  %s439_s18 = smov 8  }
 0x205   :  { %298 = dma.vmem_to_hbm [thread:$0]  %s293_s17, 256, %s544_s9, [#allocation6], %s438_s8, %s438_s8, %s439_s18  }
 0x206   :  { %428 = dma.done.wait [#allocation6], 256  }
 0x207   :  { %429 = vsyncadd [#allocation6], 4294967040 }
 0x208   :  { %302 = vsyncpa [#allocation5], 1 }
 0x209   :  { %303 = vsyncpa [#allocation8], 1 }
 0x20a   :  { %304 = vsyncpa [#allocation6], 1 }

</bundles_post_ra>
